<compile_context>
chip_gen: v5e
topology: v5e:2x2
jax: 0.10.0
libtpu: 0.0.40
codegen_flags: <defaults>
</compile_context>

<pallas_src>
import jax
import jax.numpy as jnp
from jax.experimental import pallas as pl
from jax.experimental.pallas import tpu as pltpu

_LANE = 128
_SUBLANE = 8
_CLS_PAD = 128  # lane-dense padding for the 2-way classification output


def _vmem_capacity_bytes():
    """Per-core VMEM capacity; conservative v7x default if the query fails."""
    try:
        cap = getattr(pltpu.get_tpu_info(), "vmem_capacity_bytes", None)
        if cap:
            return int(cap)
    except Exception:
        pass
    return 64 * 1024 * 1024


def _is_v5():
    try:
        return "v5" in jax.devices()[0].device_kind.lower()
    except Exception:
        return False


def _choose_tiles(B, S, H, stream_elem_bytes, stream_budget_bytes):
    """Pick (TB, TS) obeying the (8,128) BlockSpec rules and a VMEM budget.

    TS must be a multiple of 128 (mask lane dim) or the full seq axis; TB must
    be a multiple of 8 (inv_count / output sublane dim) or the full batch axis.
    Prefers >=2 batch tiles (v7x megacore), then the largest tile that fits."""
    if S % _LANE == 0:
        ts_opts = [t for t in (1024, 512, 256, 128) if t <= S and S % t == 0] or [S]
    else:
        ts_opts = [S]  # wrapper pads long awkward S to a 128 multiple first
    tb_opts = [t for t in (32, 16, 8) if t <= B and B % t == 0] or [B]

    def fits(tb, ts):
        return 2 * tb * ts * H * stream_elem_bytes <= stream_budget_bytes

    def key(tb, ts):
        return (B // tb >= 2, tb * ts)

    best = None
    for tb in tb_opts:
        for ts in ts_opts:
            if fits(tb, ts) and (best is None or key(tb, ts) > key(*best)):
                best = (tb, ts)
    if best is None:  # nothing fits the budget: take the smallest legal tile
        best = (min(tb_opts), min(ts_opts))
    return best


def head_kernel(emb_ref, mask_ref, invc_ref, wp_ref, bp_ref, wc_ref, bc_ref,
                out_ref, acc_ref):
    """Fused head: masked mean pool -> pooler dense + tanh -> cls linear.

    Grid = (batch_tiles, seq_tiles). The sequence axis is a pipelined reduction
    accumulated into the f32 VMEM scratch `acc_ref` ([TB, 1, H])."""
    s_idx = pl.program_id(1)

    @pl.when(s_idx == 0)
    def _init():
        acc_ref[...] = jnp.zeros_like(acc_ref)

    # Masked sum of this sequence tile on the MXU (f32 accumulation):
    #   mask [TB, 1, TS] (bf16) @ emb [TB, TS, H] (bf16) -> [TB, 1, H] f32
    acc_ref[...] += jax.lax.dot_general(
        mask_ref[...], emb_ref[...],
        dimension_numbers=(((2,), (1,)), ((0,), (0,))),
        preferred_element_type=jnp.float32)

    @pl.when(s_idx == pl.num_programs(1) - 1)
    def _finalize():
        tb, _, h = acc_ref.shape
        # masked mean (inverse counts precomputed in the wrapper)
        pooled = acc_ref[...].reshape(tb, h) * invc_ref[...]            # [TB, H]
        # BERT-style pooler (weights may be bf16 on v5e; accumulate in f32)
        emb_cls = jnp.tanh(
            jnp.dot(pooled.astype(wp_ref.dtype), wp_ref[...],
                    preferred_element_type=jnp.float32) + bp_ref[...])
        # classification head (lane-padded to 128 outputs; sliced in wrapper)
        out_ref[...] = (
            jnp.dot(emb_cls.astype(wc_ref.dtype), wc_ref[...],
                    preferred_element_type=jnp.float32) + bc_ref[...])


def base_model_forward(input_ids, attention_mask, token_type_ids, params):
    """Glue: embedding gathers in JAX, fused pooling/pooler/cls head in Pallas."""
    word_emb = params["word_emb"]          # [V, H] f32
    pos_emb = params["pos_emb"]            # [S, H] f32
    type_emb = params["type_emb"]          # [2, H] f32
    w_pool = params["w_pool"]              # [H, H] f32
    b_pool = params["b_pool"]              # [1, H] f32
    w_cls = params["w_cls"]                # [H, 2] f32 (pre-transposed vs torch)
    b_cls = params["b_cls"]                # [1, 2] f32

    B, S = input_ids.shape
    H = word_emb.shape[1]
    n_cls = w_cls.shape[1]

    # Pad long, non-128-multiple sequences so the seq axis can still be tiled
    # at a roofline-friendly 128-multiple (padded tokens carry mask == 0).
    if S % _LANE != 0 and S > 512:
        pad = (-S) % _LANE
        input_ids = jnp.pad(input_ids, ((0, 0), (0, pad)))
        token_type_ids = jnp.pad(token_type_ids, ((0, 0), (0, pad)))
        attention_mask = jnp.pad(attention_mask, ((0, 0), (0, pad)))
        pos_emb = jnp.pad(pos_emb, ((0, pad), (0, 0)))
        S = S + pad

    # TODO(synk): the injected `self.bert` encoder has no in-script definition;
    # it is stubbed as embeddings + masked-mean pooling + tanh pooler. The
    # gather stays in JAX glue with allow_input_fusion on the emb operand; if
    # HLO shows it does not fuse (gathers often block Mosaic input fusion),
    # move it to an in-kernel DMA row-gather (ids via PrefetchScalarGridSpec,
    # word_emb in memory_space=pl.ANY) to avoid the [B,S,H] HBM round-trip.
    emb = (jnp.take(word_emb, input_ids, axis=0)
           + pos_emb[None, :, :]
           + jnp.take(type_emb, token_type_ids, axis=0)
           ).astype(jnp.bfloat16)                                # [B, S, H] bf16

    mask3 = attention_mask.astype(jnp.bfloat16).reshape(B, 1, S)   # [B, 1, S]
    inv_count = 1.0 / jnp.maximum(
        attention_mask.astype(jnp.float32).sum(axis=1, keepdims=True), 1.0)

    # v5e: bf16-resident weights (half the resident VMEM / one-time weight DMA).
    w_dtype = jnp.bfloat16 if _is_v5() else jnp.float32
    w_pool_c = w_pool.astype(w_dtype)
    b_pool_c = b_pool.astype(jnp.float32)
    w_cls_p = (jnp.zeros((H, _CLS_PAD), jnp.float32).at[:, :n_cls].set(w_cls)
               ).astype(w_dtype)
    b_cls_p = jnp.zeros((1, _CLS_PAD), jnp.float32).at[:, :n_cls].set(b_cls)

    # Per-generation VMEM budget: never request all of v7x's 64 MiB; use most
    # of v5e/v6e's 128 MiB.
    vmem_cap = _vmem_capacity_bytes()
    vmem_limit = min(int(0.8 * vmem_cap), 112 * 1024 * 1024)
    w_bytes = jnp.dtype(w_dtype).itemsize
    weights_resident = 2 * (H * H + H + H * _CLS_PAD + _CLS_PAD) * w_bytes
    stream_budget = max(vmem_limit - weights_resident - (8 << 20), vmem_limit // 4)

    TB, TS = _choose_tiles(B, S, H, 2, stream_budget)   # emb streamed as bf16
    grid = (B // TB, S // TS)

    def _weight_spec(shape, single_buffer):
        # Constant-index resident weights: single pipeline buffer saves VMEM.
        if single_buffer:
            return pl.BlockSpec(shape, lambda b, s: (0, 0),
                                pipeline_mode=pl.Buffered(1))
        return pl.BlockSpec(shape, lambda b, s: (0, 0))

    def _call(single_buffer_weights):
        return pl.pallas_call(
            head_kernel,
            out_shape=jax.ShapeDtypeStruct((B, _CLS_PAD), jnp.float32),
            grid=grid,
            in_specs=[
                pl.BlockSpec((TB, TS, H), lambda b, s: (b, s, 0)),   # emb stream
                pl.BlockSpec((TB, 1, TS), lambda b, s: (b, 0, s)),   # mask stream
                pl.BlockSpec((TB, 1), lambda b, s: (b, 0)),          # 1/count
                _weight_spec((H, H), single_buffer_weights),         # w_pool
                _weight_spec((1, H), single_buffer_weights),         # b_pool
                _weight_spec((H, _CLS_PAD), single_buffer_weights),  # w_cls
                _weight_spec((1, _CLS_PAD), single_buffer_weights),  # b_cls
            ],
            out_specs=pl.BlockSpec((TB, _CLS_PAD), lambda b, s: (b, 0)),
            scratch_shapes=[pltpu.VMEM((TB, 1, H), jnp.float32)],    # masked-sum acc
            compiler_params=pltpu.CompilerParams(
                dimension_semantics=("parallel", "arbitrary"),
                allow_input_fusion=[True] + [False] * 6,
                vmem_limit_bytes=vmem_limit,
            ),
        )(emb, mask3, inv_count, w_pool_c, b_pool_c, w_cls_p, b_cls_p)

    try:
        logits_padded = jax.block_until_ready(_call(hasattr(pl, "Buffered")))
    except Exception:
        # pipeline_mode / Buffered(1) unsupported: default double-buffering.
        logits_padded = _call(False)

    return logits_padded[:, :n_cls]


def reference_forward(input_ids, attention_mask, token_type_ids, params):
    """Pure-JAX f32 reference of the same stub (for correctness check)."""
    emb = (jnp.take(params["word_emb"], input_ids, axis=0)
           + params["pos_emb"][None, :, :]
           + jnp.take(params["type_emb"], token_type_ids, axis=0))
    mask = attention_mask.astype(jnp.float32)
    summed = jnp.einsum("bs,bsh->bh", mask, emb)
    pooled = summed / jnp.maximum(mask.sum(axis=1, keepdims=True), 1.0)
    emb_cls = jnp.tanh(pooled @ params["w_pool"] + params["b_pool"])
    return emb_cls @ params["w_cls"] + params["b_cls"]


def init_params(key, vocab_size, seq_len, hidden_size):
    ks = jax.random.split(key, 5)
    scale = 0.02
    return {
        "word_emb": scale * jax.random.normal(ks[0], (vocab_size, hidden_size), jnp.float32),
        "pos_emb": scale * jax.random.normal(ks[1], (seq_len, hidden_size), jnp.float32),
        "type_emb": scale * jax.random.normal(ks[2], (2, hidden_size), jnp.float32),
        "w_pool": scale * jax.random.normal(ks[3], (hidden_size, hidden_size), jnp.float32),
        "b_pool": jnp.zeros((1, hidden_size), jnp.float32),
        # nn.Linear(hidden_size, 2): torch weight [2, H], stored transposed [H, 2]
        "w_cls": scale * jax.random.normal(ks[4], (hidden_size, 2), jnp.float32),
        "b_cls": jnp.zeros((1, 2), jnp.float32),
    }


if __name__ == "__main__":
    B, S, H, V = 2, 8, 32, 64

    key = jax.random.PRNGKey(0)
    k_ids, k_params = jax.random.split(key)

    input_ids = jax.random.randint(k_ids, (B, S), 0, V, dtype=jnp.int32)
    attention_mask = jnp.ones((B, S), jnp.int32).at[:, S - 2:].set(0)  # 2 pad tokens
    token_type_ids = jnp.zeros((B, S), jnp.int32).at[:, S // 2:].set(1)

    params = init_params(k_params, V, S, H)

    logits = jax.block_until_ready(
        base_model_forward(input_ids, attention_mask, token_type_ids, params))
    ref = reference_forward(input_ids, attention_mask, token_type_ids, params)

    assert logits.shape == (B, 2) and logits.dtype == jnp.float32
    assert bool(jnp.all(jnp.isfinite(logits)))
    assert bool(jnp.allclose(logits, ref, atol=1e-2, rtol=1e-1)), (logits, ref)
    print("KERNEL_OK")
</pallas_src>

<mosaic_0001>
module attributes {stable_mosaic.version = 11 : i64} {
  func.func @head_kernel(%arg0: i32, %arg1: i32, %arg2: memref<2x8x32xbf16, #tpu.memory_space<vmem>>, %arg3: memref<2x1x8xbf16, #tpu.memory_space<vmem>>, %arg4: memref<2x1xf32, #tpu.memory_space<vmem>>, %arg5: memref<32x32xf32, #tpu.memory_space<vmem>>, %arg6: memref<1x32xf32, #tpu.memory_space<vmem>>, %arg7: memref<32x128xf32, #tpu.memory_space<vmem>>, %arg8: memref<1x128xf32, #tpu.memory_space<vmem>>, %arg9: memref<2x128xf32, #tpu.memory_space<vmem>>, %arg10: memref<2x1x32xf32, #tpu.memory_space<vmem>>) attributes {dimension_semantics = [#tpu.dimension_semantics<parallel>, #tpu.dimension_semantics<arbitrary>], iteration_bounds = array<i64: 1, 1>, scalar_prefetch = 0 : i64, scratch_operands = 1 : i64, tpu.core_type = #tpu.core_type<tc>, window_params = [{transform_indices = @transform_0, window_bounds = array<i64: 2, 8, 32>}, {transform_indices = @transform_1, window_bounds = array<i64: 2, 1, 8>}, {transform_indices = @transform_2, window_bounds = array<i64: 2, 1>}, {pipeline_mode = #tpu.pipeline_mode<synchronous>, transform_indices = @transform_3, window_bounds = array<i64: 32, 32>}, {pipeline_mode = #tpu.pipeline_mode<synchronous>, transform_indices = @transform_4, window_bounds = array<i64: 1, 32>}, {pipeline_mode = #tpu.pipeline_mode<synchronous>, transform_indices = @transform_5, window_bounds = array<i64: 32, 128>}, {pipeline_mode = #tpu.pipeline_mode<synchronous>, transform_indices = @transform_6, window_bounds = array<i64: 1, 128>}, {transform_indices = @transform_7, window_bounds = array<i64: 2, 128>}]} {
    %c0_i32 = arith.constant 0 : i32
    %0 = arith.cmpi eq, %arg1, %c0_i32 : i32
    %1 = arith.extui %0 : i1 to i32
    %c0_i32_0 = arith.constant 0 : i32
    %2 = arith.cmpi ne, %1, %c0_i32_0 : i32
    scf.if %2 {
      %cst_14 = arith.constant 0.000000e+00 : f32
      %12 = vector.broadcast %cst_14 : f32 to vector<2x1x32xf32>
      %c0_15 = arith.constant 0 : index
      %c0_16 = arith.constant 0 : index
      %c0_17 = arith.constant 0 : index
      %13 = vector.load %arg10[%c0_15, %c0_16, %c0_17] : memref<2x1x32xf32, #tpu.memory_space<vmem>>, vector<2x1x32xf32>
      tpu.vector_store %arg10[%c0_15, %c0_16, %c0_17], %12 {strides = array<i32>} : memref<2x1x32xf32, #tpu.memory_space<vmem>>, vector<2x1x32xf32>,
    } else {
    }
    %c0 = arith.constant 0 : index
    %c0_1 = arith.constant 0 : index
    %c0_2 = arith.constant 0 : index
    %3 = vector.load %arg10[%c0, %c0_1, %c0_2] : memref<2x1x32xf32, #tpu.memory_space<vmem>>, vector<2x1x32xf32>
    %c0_3 = arith.constant 0 : index
    %c0_4 = arith.constant 0 : index
    %c0_5 = arith.constant 0 : index
    %4 = vector.load %arg3[%c0_3, %c0_4, %c0_5] : memref<2x1x8xbf16, #tpu.memory_space<vmem>>, vector<2x1x8xbf16>
    %c0_6 = arith.constant 0 : index
    %c0_7 = arith.constant 0 : index
    %c0_8 = arith.constant 0 : index
    %5 = vector.load %arg2[%c0_6, %c0_7, %c0_8] : memref<2x8x32xbf16, #tpu.memory_space<vmem>>, vector<2x8x32xbf16>
    %cst = arith.constant dense<0.000000e+00> : vector<2x1x32xf32>
    %6 = tpu.matmul %4, %5, %cst {dimension_numbers = #tpu.dot_dimension_numbers<[2], [1], [1], [2], [0, 0, 0, 1, 1, 2], [0], [0]>} : vector<2x1x8xbf16>, vector<2x8x32xbf16>, vector<2x1x32xf32> -> vector<2x1x32xf32>
    %7 = arith.addf %3, %6 : vector<2x1x32xf32>
    %c0_9 = arith.constant 0 : index
    %c0_10 = arith.constant 0 : index
    %c0_11 = arith.constant 0 : index
    %8 = vector.load %arg10[%c0_9, %c0_10, %c0_11] : memref<2x1x32xf32, #tpu.memory_space<vmem>>, vector<2x1x32xf32>
    tpu.vector_store %arg10[%c0_9, %c0_10, %c0_11], %7 {strides = array<i32>} : memref<2x1x32xf32, #tpu.memory_space<vmem>>, vector<2x1x32xf32>,
    %c0_i32_12 = arith.constant 0 : i32
    %9 = arith.cmpi eq, %arg1, %c0_i32_12 : i32
    %10 = arith.extui %9 : i1 to i32
    %c0_i32_13 = arith.constant 0 : i32
    %11 = arith.cmpi ne, %10, %c0_i32_13 : i32
    scf.if %11 {
      %c0_14 = arith.constant 0 : index
      %c0_15 = arith.constant 0 : index
      %c0_16 = arith.constant 0 : index
      %12 = vector.load %arg10[%c0_14, %c0_15, %c0_16] : memref<2x1x32xf32, #tpu.memory_space<vmem>>, vector<2x1x32xf32>
      %13 = vector.shape_cast %12 : vector<2x1x32xf32> to vector<2x32xf32>
      %c0_17 = arith.constant 0 : index
      %c0_18 = arith.constant 0 : index
      %14 = vector.load %arg4[%c0_17, %c0_18] : memref<2x1xf32, #tpu.memory_space<vmem>>, vector<2x1xf32>
      %15 = vector.broadcast %14 : vector<2x1xf32> to vector<2x32xf32>
      %16 = arith.mulf %13, %15 : vector<2x32xf32>
      %c0_19 = arith.constant 0 : index
      %c0_20 = arith.constant 0 : index
      %17 = vector.load %arg5[%c0_19, %c0_20] : memref<32x32xf32, #tpu.memory_space<vmem>>, vector<32x32xf32>
      %cst_21 = arith.constant dense<0.000000e+00> : vector<2x32xf32>
      %18 = tpu.matmul %16, %17, %cst_21 {dimension_numbers = #tpu.dot_dimension_numbers<[1], [0], [0], [1], [0, 0, 1, 1], [], []>} : vector<2x32xf32>, vector<32x32xf32>, vector<2x32xf32> -> vector<2x32xf32>
      %c0_22 = arith.constant 0 : index
      %c0_23 = arith.constant 0 : index
      %19 = vector.load %arg6[%c0_22, %c0_23] : memref<1x32xf32, #tpu.memory_space<vmem>>, vector<1x32xf32>
      %20 = vector.broadcast %19 : vector<1x32xf32> to vector<2x32xf32>
      %21 = arith.addf %18, %20 : vector<2x32xf32>
      %22 = math.tanh %21 : vector<2x32xf32>
      %c0_24 = arith.constant 0 : index
      %c0_25 = arith.constant 0 : index
      %23 = vector.load %arg7[%c0_24, %c0_25] : memref<32x128xf32, #tpu.memory_space<vmem>>, vector<32x128xf32>
      %cst_26 = arith.constant dense<0.000000e+00> : vector<2x128xf32>
      %24 = tpu.matmul %22, %23, %cst_26 {dimension_numbers = #tpu.dot_dimension_numbers<[1], [0], [0], [1], [0, 0, 1, 1], [], []>} : vector<2x32xf32>, vector<32x128xf32>, vector<2x128xf32> -> vector<2x128xf32>
      %c0_27 = arith.constant 0 : index
      %c0_28 = arith.constant 0 : index
      %25 = vector.load %arg8[%c0_27, %c0_28] : memref<1x128xf32, #tpu.memory_space<vmem>>, vector<1x128xf32>
      %26 = vector.broadcast %25 : vector<1x128xf32> to vector<2x128xf32>
      %27 = arith.addf %24, %26 : vector<2x128xf32>
      %c0_29 = arith.constant 0 : index
      %c0_30 = arith.constant 0 : index
      %28 = vector.load %arg9[%c0_29, %c0_30] : memref<2x128xf32, #tpu.memory_space<vmem>>, vector<2x128xf32>
      tpu.vector_store %arg9[%c0_29, %c0_30], %27 {strides = array<i32>} : memref<2x128xf32, #tpu.memory_space<vmem>>, vector<2x128xf32>,
    } else {
    }
    return
  }
  func.func @transform_0(%arg0: i32, %arg1: i32) -> (i32, i32, i32) {
    %c0_i32 = arith.constant 0 : i32
    %c0_i32_0 = arith.constant 0 : i32
    return %arg0, %arg1, %c0_i32 : i32, i32, i32
  }
  func.func @transform_1(%arg0: i32, %arg1: i32) -> (i32, i32, i32) {
    %c0_i32 = arith.constant 0 : i32
    %c0_i32_0 = arith.constant 0 : i32
    return %arg0, %c0_i32, %arg1 : i32, i32, i32
  }
  func.func @transform_2(%arg0: i32, %arg1: i32) -> (i32, i32) {
    %c0_i32 = arith.constant 0 : i32
    %c0_i32_0 = arith.constant 0 : i32
    return %arg0, %c0_i32 : i32, i32
  }
  func.func @transform_3(%arg0: i32, %arg1: i32) -> (i32, i32) {
    %c0_i32 = arith.constant 0 : i32
    %c0_i32_0 = arith.constant 0 : i32
    %c0_i32_1 = arith.constant 0 : i32
    return %c0_i32, %c0_i32_0 : i32, i32
  }
  func.func @transform_4(%arg0: i32, %arg1: i32) -> (i32, i32) {
    %c0_i32 = arith.constant 0 : i32
    %c0_i32_0 = arith.constant 0 : i32
    %c0_i32_1 = arith.constant 0 : i32
    return %c0_i32, %c0_i32_0 : i32, i32
  }
  func.func @transform_5(%arg0: i32, %arg1: i32) -> (i32, i32) {
    %c0_i32 = arith.constant 0 : i32
    %c0_i32_0 = arith.constant 0 : i32
    %c0_i32_1 = arith.constant 0 : i32
    return %c0_i32, %c0_i32_0 : i32, i32
  }
  func.func @transform_6(%arg0: i32, %arg1: i32) -> (i32, i32) {
    %c0_i32 = arith.constant 0 : i32
    %c0_i32_0 = arith.constant 0 : i32
    %c0_i32_1 = arith.constant 0 : i32
    return %c0_i32, %c0_i32_0 : i32, i32
  }
  func.func @transform_7(%arg0: i32, %arg1: i32) -> (i32, i32) {
    %c0_i32 = arith.constant 0 : i32
    %c0_i32_0 = arith.constant 0 : i32
    return %arg0, %c0_i32 : i32, i32
  }
}

module attributes {stable_mosaic.version = 11 : i64} {
  func.func @head_kernel(%arg0: i32, %arg1: i32, %arg2: memref<2x8x32xbf16, #tpu.memory_space<vmem>>, %arg3: memref<2x1x8xbf16, #tpu.memory_space<vmem>>, %arg4: memref<2x1xf32, #tpu.memory_space<vmem>>, %arg5: memref<32x32xf32, #tpu.memory_space<vmem>>, %arg6: memref<1x32xf32, #tpu.memory_space<vmem>>, %arg7: memref<32x128xf32, #tpu.memory_space<vmem>>, %arg8: memref<1x128xf32, #tpu.memory_space<vmem>>, %arg9: memref<2x128xf32, #tpu.memory_space<vmem>>, %arg10: memref<2x1x32xf32, #tpu.memory_space<vmem>>) attributes {dimension_semantics = [#tpu.dimension_semantics<parallel>, #tpu.dimension_semantics<arbitrary>], iteration_bounds = array<i64: 1, 1>, scalar_prefetch = 0 : i64, scratch_operands = 1 : i64, tpu.core_type = #tpu.core_type<tc>, window_params = [{transform_indices = @transform_0, window_bounds = array<i64: 2, 8, 32>}, {transform_indices = @transform_1, window_bounds = array<i64: 2, 1, 8>}, {transform_indices = @transform_2, window_bounds = array<i64: 2, 1>}, {pipeline_mode = #tpu.pipeline_mode<synchronous>, transform_indices = @transform_3, window_bounds = array<i64: 32, 32>}, {pipeline_mode = #tpu.pipeline_mode<synchronous>, transform_indices = @transform_4, window_bounds = array<i64: 1, 32>}, {pipeline_mode = #tpu.pipeline_mode<synchronous>, transform_indices = @transform_5, window_bounds = array<i64: 32, 128>}, {pipeline_mode = #tpu.pipeline_mode<synchronous>, transform_indices = @transform_6, window_bounds = array<i64: 1, 128>}, {transform_indices = @transform_7, window_bounds = array<i64: 2, 128>}]} {
    %c0_i32 = arith.constant 0 : i32
    %0 = arith.cmpi eq, %arg1, %c0_i32 : i32
    %1 = arith.extui %0 : i1 to i32
    %c0_i32_0 = arith.constant 0 : i32
    %2 = arith.cmpi ne, %1, %c0_i32_0 : i32
    scf.if %2 {
      %cst_14 = arith.constant 0.000000e+00 : f32
      %12 = vector.broadcast %cst_14 : f32 to vector<2x1x32xf32>
      %c0_15 = arith.constant 0 : index
      %c0_16 = arith.constant 0 : index
      %c0_17 = arith.constant 0 : index
      %13 = vector.load %arg10[%c0_15, %c0_16, %c0_17] : memref<2x1x32xf32, #tpu.memory_space<vmem>>, vector<2x1x32xf32>
      tpu.vector_store %arg10[%c0_15, %c0_16, %c0_17], %12 {strides = array<i32>} : memref<2x1x32xf32, #tpu.memory_space<vmem>>, vector<2x1x32xf32>,
    } else {
    }
    %c0 = arith.constant 0 : index
    %c0_1 = arith.constant 0 : index
    %c0_2 = arith.constant 0 : index
    %3 = vector.load %arg10[%c0, %c0_1, %c0_2] : memref<2x1x32xf32, #tpu.memory_space<vmem>>, vector<2x1x32xf32>
    %c0_3 = arith.constant 0 : index
    %c0_4 = arith.constant 0 : index
    %c0_5 = arith.constant 0 : index
    %4 = vector.load %arg3[%c0_3, %c0_4, %c0_5] : memref<2x1x8xbf16, #tpu.memory_space<vmem>>, vector<2x1x8xbf16>
    %c0_6 = arith.constant 0 : index
    %c0_7 = arith.constant 0 : index
    %c0_8 = arith.constant 0 : index
    %5 = vector.load %arg2[%c0_6, %c0_7, %c0_8] : memref<2x8x32xbf16, #tpu.memory_space<vmem>>, vector<2x8x32xbf16>
    %cst = arith.constant dense<0.000000e+00> : vector<2x1x32xf32>
    %6 = tpu.matmul %4, %5, %cst {dimension_numbers = #tpu.dot_dimension_numbers<[2], [1], [1], [2], [0, 0, 0, 1, 1, 2], [0], [0]>} : vector<2x1x8xbf16>, vector<2x8x32xbf16>, vector<2x1x32xf32> -> vector<2x1x32xf32>
    %7 = arith.addf %3, %6 : vector<2x1x32xf32>
    %c0_9 = arith.constant 0 : index
    %c0_10 = arith.constant 0 : index
    %c0_11 = arith.constant 0 : index
    %8 = vector.load %arg10[%c0_9, %c0_10, %c0_11] : memref<2x1x32xf32, #tpu.memory_space<vmem>>, vector<2x1x32xf32>
    tpu.vector_store %arg10[%c0_9, %c0_10, %c0_11], %7 {strides = array<i32>} : memref<2x1x32xf32, #tpu.memory_space<vmem>>, vector<2x1x32xf32>,
    %c0_i32_12 = arith.constant 0 : i32
    %9 = arith.cmpi eq, %arg1, %c0_i32_12 : i32
    %10 = arith.extui %9 : i1 to i32
    %c0_i32_13 = arith.constant 0 : i32
    %11 = arith.cmpi ne, %10, %c0_i32_13 : i32
    scf.if %11 {
      %c0_14 = arith.constant 0 : index
      %c0_15 = arith.constant 0 : index
      %c0_16 = arith.constant 0 : index
      %12 = vector.load %arg10[%c0_14, %c0_15, %c0_16] : memref<2x1x32xf32, #tpu.memory_space<vmem>>, vector<2x1x32xf32>
      %13 = vector.shape_cast %12 : vector<2x1x32xf32> to vector<2x32xf32>
      %c0_17 = arith.constant 0 : index
      %c0_18 = arith.constant 0 : index
      %14 = vector.load %arg4[%c0_17, %c0_18] : memref<2x1xf32, #tpu.memory_space<vmem>>, vector<2x1xf32>
      %15 = vector.broadcast %14 : vector<2x1xf32> to vector<2x32xf32>
      %16 = arith.mulf %13, %15 : vector<2x32xf32>
      %c0_19 = arith.constant 0 : index
      %c0_20 = arith.constant 0 : index
      %17 = vector.load %arg5[%c0_19, %c0_20] : memref<32x32xf32, #tpu.memory_space<vmem>>, vector<32x32xf32>
      %cst_21 = arith.constant dense<0.000000e+00> : vector<2x32xf32>
      %18 = tpu.matmul %16, %17, %cst_21 {dimension_numbers = #tpu.dot_dimension_numbers<[1], [0], [0], [1], [0, 0, 1, 1], [], []>} : vector<2x32xf32>, vector<32x32xf32>, vector<2x32xf32> -> vector<2x32xf32>
      %c0_22 = arith.constant 0 : index
      %c0_23 = arith.constant 0 : index
      %19 = vector.load %arg6[%c0_22, %c0_23] : memref<1x32xf32, #tpu.memory_space<vmem>>, vector<1x32xf32>
      %20 = vector.broadcast %19 : vector<1x32xf32> to vector<2x32xf32>
      %21 = arith.addf %18, %20 : vector<2x32xf32>
      %22 = math.tanh %21 : vector<2x32xf32>
      %c0_24 = arith.constant 0 : index
      %c0_25 = arith.constant 0 : index
      %23 = vector.load %arg7[%c0_24, %c0_25] : memref<32x128xf32, #tpu.memory_space<vmem>>, vector<32x128xf32>
      %cst_26 = arith.constant dense<0.000000e+00> : vector<2x128xf32>
      %24 = tpu.matmul %22, %23, %cst_26 {dimension_numbers = #tpu.dot_dimension_numbers<[1], [0], [0], [1], [0, 0, 1, 1], [], []>} : vector<2x32xf32>, vector<32x128xf32>, vector<2x128xf32> -> vector<2x128xf32>
      %c0_27 = arith.constant 0 : index
      %c0_28 = arith.constant 0 : index
      %25 = vector.load %arg8[%c0_27, %c0_28] : memref<1x128xf32, #tpu.memory_space<vmem>>, vector<1x128xf32>
      %26 = vector.broadcast %25 : vector<1x128xf32> to vector<2x128xf32>
      %27 = arith.addf %24, %26 : vector<2x128xf32>
      %c0_29 = arith.constant 0 : index
      %c0_30 = arith.constant 0 : index
      %28 = vector.load %arg9[%c0_29, %c0_30] : memref<2x128xf32, #tpu.memory_space<vmem>>, vector<2x128xf32>
      tpu.vector_store %arg9[%c0_29, %c0_30], %27 {strides = array<i32>} : memref<2x128xf32, #tpu.memory_space<vmem>>, vector<2x128xf32>,
    } else {
    }
    return
  }
  func.func @transform_0(%arg0: i32, %arg1: i32) -> (i32, i32, i32) {
    %c0_i32 = arith.constant 0 : i32
    %c0_i32_0 = arith.constant 0 : i32
    return %arg0, %arg1, %c0_i32 : i32, i32, i32
  }
  func.func @transform_1(%arg0: i32, %arg1: i32) -> (i32, i32, i32) {
    %c0_i32 = arith.constant 0 : i32
    %c0_i32_0 = arith.constant 0 : i32
    return %arg0, %c0_i32, %arg1 : i32, i32, i32
  }
  func.func @transform_2(%arg0: i32, %arg1: i32) -> (i32, i32) {
    %c0_i32 = arith.constant 0 : i32
    %c0_i32_0 = arith.constant 0 : i32
    return %arg0, %c0_i32 : i32, i32
  }
  func.func @transform_3(%arg0: i32, %arg1: i32) -> (i32, i32) {
    %c0_i32 = arith.constant 0 : i32
    %c0_i32_0 = arith.constant 0 : i32
    %c0_i32_1 = arith.constant 0 : i32
    return %c0_i32, %c0_i32_0 : i32, i32
  }
  func.func @transform_4(%arg0: i32, %arg1: i32) -> (i32, i32) {
    %c0_i32 = arith.constant 0 : i32
    %c0_i32_0 = arith.constant 0 : i32
    %c0_i32_1 = arith.constant 0 : i32
    return %c0_i32, %c0_i32_0 : i32, i32
  }
  func.func @transform_5(%arg0: i32, %arg1: i32) -> (i32, i32) {
    %c0_i32 = arith.constant 0 : i32
    %c0_i32_0 = arith.constant 0 : i32
    %c0_i32_1 = arith.constant 0 : i32
    return %c0_i32, %c0_i32_0 : i32, i32
  }
  func.func @transform_6(%arg0: i32, %arg1: i32) -> (i32, i32) {
    %c0_i32 = arith.constant 0 : i32
    %c0_i32_0 = arith.constant 0 : i32
    %c0_i32_1 = arith.constant 0 : i32
    return %c0_i32, %c0_i32_0 : i32, i32
  }
  func.func @transform_7(%arg0: i32, %arg1: i32) -> (i32, i32) {
    %c0_i32 = arith.constant 0 : i32
    %c0_i32_0 = arith.constant 0 : i32
    return %arg0, %c0_i32 : i32, i32
  }
}

</mosaic_0001>

<bundles_post_ra>
// kernel: tpu_custom_call.1
= control target key start
LH: loop header
LB: loop body
LE: loop exit
PB: predicated region body
PF: predicated region fallthrough
CT: control target
= control target key end

     0   :  { %12 = vsyncpa [#allocation4], 0  ;;  %s441_s0 = inlined_call_operand.hbm [shape: bf16[2,8,32], index: 0, kind: input, shape index: {}]   ;;  %s442_s1 = inlined_call_operand.vmem [shape: bf16[2,1,8], index: 1, kind: input, shape index: {}]   ;;  %s443_s2 = inlined_call_operand.vmem [shape: f32[2,1], index: 2, kind: input, shape index: {}]   ;;  %s444_s3 = inlined_call_operand.hbm [shape: f32[32,32], index: 3, kind: input, shape index: {}]   ;;  %s445_s4 = inlined_call_operand.vmem [shape: f32[1,32], index: 4, kind: input, shape index: {}]   ;;  %s446_s5 = inlined_call_operand.hbm [shape: f32[32,128], index: 5, kind: input, shape index: {}]   ;;  %s447_s6 = inlined_call_operand.vmem [shape: f32[1,128], index: 6, kind: input, shape index: {}]   ;;  %s448_s7 = inlined_call_operand.hbm [shape: f32[2,128], index: 7, kind: output, shape index: {}]  }
   0x1   :  { %13 = vsyncpa [#allocation7], 0  ;;  %s36_s26 = sshll.u32 %s444_s3, 4  ;;  %s37_s26 = int_to_ptr.hbm [resolvable:$true] %s36_s26 }
   0x2   :  { %14 = vsyncpa [#allocation5], 0  ;;  %s358_s27 = smov [#allocation6]   ;;  %s19_s8 = sshll.u32 %s441_s0, 4  ;;  %s20_s8 = int_to_ptr.hbm [resolvable:$true] %s19_s8 }
   0x3   :  { %s38_s28 = sshll.u32 %s358_s27, 4  ;;  %s359_s9 = smov 128   ;;  %s39_s28 = int_to_ptr.vmem [resolvable:$true] %s38_s28 }
   0x4   :  { %s360_s10 = smov 8   ;;  %s361_s11 = smov [#allocation3]  }
   0x5   :  { %44 = dma.hbm_to_vmem [thread:$0]  %s37_s26, 512, %s39_s28, [#allocation7], %s359_s9, %s359_s9, %s360_s10  }
   0x6   :  { %s21_s12 = sshll.u32 %s361_s11, 4  ;;  %s362_s13 = smov 64   ;;  %s22_s12 = int_to_ptr.vmem [resolvable:$true] %s21_s12 }
   0x7   :  { %s363_s14 = smov 4   ;;  %s51_s16 = sshll.u32 %s446_s5, 4  ;;  %s52_s16 = int_to_ptr.hbm [resolvable:$true] %s51_s16 }
   0x8   :  { %27 = dma.hbm_to_vmem [thread:$0]  %s20_s8, 128, %s22_s12, [#allocation4], %s362_s13, %s362_s13, %s363_s14  }
   0x9   :  { %s364_s17 = smov [#allocation8]  }
   0xa   :  { %s53_s18 = sshll.u32 %s364_s17, 4  ;;  %s54_s18 = int_to_ptr.vmem [resolvable:$true] %s53_s18 }
   0xb   :  { %59 = dma.hbm_to_vmem [thread:$0]  %s52_s16, 512, %s54_s18, [#allocation7], %s359_s9, %s359_s9, %s360_s10  }
   0xc   :  { %352 = dma.done.wait [#allocation4], 128  }
   0xd   :  { %353 = vsyncadd [#allocation4], 4294967168 }
   0xe   :  { %354 = dma.done.wait [#allocation7], 1024  }
   0xf   :  { %355 = vsyncadd [#allocation7], 4294966272  ;;  %vm79_vm0 = vcmask 253952   ;;  %v365_v0 = vmov 0   ;;  %v366_v1 = vmov 0.0   ;;  %vm92_vm1 = vcmask 1043456  }
  0x10   :  { %251 = vset.pattern.permute.xlu0 %v365_v0  ;;  %80 = vst.msk [vmem:[#allocation2] sm:$0x1] %vm79_vm0, %v366_v1  ;;  %v86_v2 = vld [vmem:[#allocation3] sm:$0xf]  ;;  %v87_v3 = vld [vmem:[#allocation3 + $0x4] sm:$0xf] }
  0x11   :  { %81 = vst.msk [vmem:[#allocation2 + $0x1] sm:$0x1] %vm79_vm0, %v366_v1  ;;  %vm88_vm2 = vcmask 64512   ;;  %v94_v4 = vsel %vm92_vm1, %v86_v2, 0  ;;  %v113_v5 = vsel %vm92_vm1, %v87_v3, 0  ;;  %v152_v9 = vld [vmem:[#allocation6 + $0x18] sm:$0xff] }
  0x12   :  { %v84_v6 = vld [vmem:[%s442_s1] sm:$0x1]  ;;  %103 = vmatpush.bf16.msra.mxu0 %v94_v4  ;;  %122 = vmatpush.bf16.msra.mxu1 %v113_v5  ;;  %v85_v8 = vld [vmem:[%s442_s1 + $0x1] sm:$0x1]  ;;  %v151_v10 = vld [vmem:[#allocation6 + $0x10] sm:$0xff]  ;;  %vm163_vm3 = vcmask 261120  }
  0x13   :  { %v138_v7 = vld [vmem:[%s443_s2] sm:$0x3]  ;;  %178 = vmatpush.msra.mxu2 %v152_v9  ;;  %v149_v12 = vld [vmem:[#allocation6] sm:$0xff]  ;;  %v190_v29 = vld [vmem:[#allocation8 + $0x18] sm:$0xff]  ;;  %s367_s25 = smov [#allocation9]   ;;  %s226_s29 = sshll.u32 %s448_s7, 4  ;;  %s227_s29 = int_to_ptr.hbm [resolvable:$true] %s226_s29 }
  0x14   :  { %141 = vperm.xlu0 %251, %v138_v7   ;;  %v150_v11 = vld [vmem:[#allocation6 + $0x8] sm:$0xff]  ;;  %210 = vmatpush.msra.mxu3 %v190_v29  ;;  %v189_v30 = vld [vmem:[#allocation8 + $0x10] sm:$0xff]  ;;  %v187_v32 = vld [vmem:[#allocation8] sm:$0xff]  ;;  %s224_s26 = sshll.u32 %s367_s25, 4  ;;  %s225_s26 = int_to_ptr.vmem [resolvable:$true] %s224_s26 }
  0x15   :  { %237 = vmatmul.msk.bf16.vlgmr.msra.gmra.mxu0 %vm88_vm2, %v84_v6  ;;  %238 = vmatmul.msk.bf16.vlgmr.msra.gmra.mxu1 %vm88_vm2, %v85_v8  ;;  %v188_v31 = vld [vmem:[#allocation8 + $0x8] sm:$0xff] }
  0x16   :  { %179 = vmatpush.msra.mxu2 %v151_v10  ;;  %211 = vmatpush.msra.mxu3 %v189_v30  ;;  %v252_v33 = vld [vmem:[%s445_s4] ss:$0 sm:$0xff] }
  0x17   :  { %v82_v13 = vld [vmem:[#allocation2] sm:$0x1]  ;;  %v253_v37 = vld [vmem:[%s447_s6] ss:$0 sm:$0xff] }
  0x18   :  { %180 = vmatpush.msra.mxu2 %v150_v11  ;;  %v83_v14 = vld [vmem:[#allocation2 + $0x1] sm:$0x1]  ;;  %212 = vmatpush.msra.mxu3 %v188_v31 }
  0x1a   :  { %181 = vmatpush.msra.mxu2 %v149_v12  ;;  %213 = vmatpush.msra.mxu3 %v187_v32 }
  0x86   :  { %v142_v19 = vpop.permute.xlu0 %141 }
  0x87   :  { %v143_v20 = vperm.slane %v142_v19, 0  ;;  %v144_v21 = vperm.slane %v142_v19, 1 }
  0x92   :  { %v105_v15 = vpop.f32.mrf.mxu0  ;;  %v124_v16 = vpop.f32.mrf.mxu1 }
  0x93   :  { %v128_v17 = vadd.f32 %v105_v15, %v82_v13  ;;  %v129_v18 = vadd.f32 %v124_v16, %v83_v14 }
  0x95   :  { %131 = vst.msk [vmem:[#allocation2] sm:$0x1] %vm79_vm0, %v128_v17 }
  0x96   :  { %132 = vst.msk [vmem:[#allocation2 + $0x1] sm:$0x1] %vm79_vm0, %v129_v18 }
  0x9a   :  { %v107_v22 = vpop.f32.mrf.mxu0  ;;  %v126_v23 = vpop.f32.mrf.mxu1 }
  0x9c   :  { %v136_v24 = vld [vmem:[#allocation2] sm:$0x1] }
  0x9d   :  { %v137_v25 = vld [vmem:[#allocation2 + $0x1] sm:$0x1]  ;;  %v147_v26 = vmul.f32 %v143_v20, %v136_v24 }
  0x9e   :  { %v148_v27 = vmul.f32 %v144_v21, %v137_v25 }
  0x9f   :  { %159 = vst [vmem:[#allocation1] ss:$9 sm:$0xff] %v147_v26 }
  0xa0   :  { %161 = vst [vmem:[#allocation1 + $0x1] ss:$9 sm:$0xff] %v148_v27 }
  0xa7   :  { %v162_v28 = vld [vmem:[#allocation1] sm:$0xff] }
  0xa8   :  { %239 = vmatmul.msk.f32.vlgmr.msra.gmra.mxu2 %vm163_vm3, %v162_v28 }
 0x12b   :  { %v183_v34 = vpop.f32.mrf.mxu2 }
 0x12c   :  { %v184_v35 = vadd.f32 %v252_v33, %v183_v34 }
 0x12e   :  { %254 = vtanh.f32 %v184_v35 }
 0x134   :  { %v255_v36 = vpop.eup %254 }
 0x135   :  { %240 = vmatmul.msk.f32.vlgmr.msra.gmra.mxu3 %vm163_vm3, %v255_v36 }
 0x1b8   :  { %v215_v38 = vpop.f32.mrf.mxu3 }
 0x1b9   :  { %v216_v39 = vadd.f32 %v253_v37, %v215_v38 }
 0x1bb   :  { %218 = vst [vmem:[#allocation9] sm:$0x3] %v216_v39 }
 0x1bc   :  { %229 = dma.vmem_to_hbm [thread:$0]  %s225_s26, 32, %s227_s29, [#allocation5]  }
 0x1bd   :  { %356 = dma.done.wait [#allocation5], 32  }
 0x1be   :  { %357 = vsyncadd [#allocation5], 4294967264 }
 0x1bf   :  { %234 = vsyncpa [#allocation4], 1 }
 0x1c0   :  { %235 = vsyncpa [#allocation7], 1 }
 0x1c1   :  { %236 = vsyncpa [#allocation5], 1 }

// kernel: tpu_custom_call.1
= control target key start
LH: loop header
LB: loop body
LE: loop exit
PB: predicated region body
PF: predicated region fallthrough
CT: control target
= control target key end

     0   :  { %12 = vsyncpa [#allocation4], 0  ;;  %s441_s0 = inlined_call_operand.hbm [shape: bf16[2,8,32], index: 0, kind: input, shape index: {}]   ;;  %s442_s1 = inlined_call_operand.vmem [shape: bf16[2,1,8], index: 1, kind: input, shape index: {}]   ;;  %s443_s2 = inlined_call_operand.vmem [shape: f32[2,1], index: 2, kind: input, shape index: {}]   ;;  %s444_s3 = inlined_call_operand.hbm [shape: f32[32,32], index: 3, kind: input, shape index: {}]   ;;  %s445_s4 = inlined_call_operand.vmem [shape: f32[1,32], index: 4, kind: input, shape index: {}]   ;;  %s446_s5 = inlined_call_operand.hbm [shape: f32[32,128], index: 5, kind: input, shape index: {}]   ;;  %s447_s6 = inlined_call_operand.vmem [shape: f32[1,128], index: 6, kind: input, shape index: {}]   ;;  %s448_s7 = inlined_call_operand.hbm [shape: f32[2,128], index: 7, kind: output, shape index: {}]  }
   0x1   :  { %13 = vsyncpa [#allocation7], 0  ;;  %s36_s26 = sshll.u32 %s444_s3, 4  ;;  %s37_s26 = int_to_ptr.hbm [resolvable:$true] %s36_s26 }
   0x2   :  { %14 = vsyncpa [#allocation5], 0  ;;  %s358_s27 = smov [#allocation6]   ;;  %s19_s8 = sshll.u32 %s441_s0, 4  ;;  %s20_s8 = int_to_ptr.hbm [resolvable:$true] %s19_s8 }
   0x3   :  { %s38_s28 = sshll.u32 %s358_s27, 4  ;;  %s359_s9 = smov 128   ;;  %s39_s28 = int_to_ptr.vmem [resolvable:$true] %s38_s28 }
   0x4   :  { %s360_s10 = smov 8   ;;  %s361_s11 = smov [#allocation3]  }
   0x5   :  { %44 = dma.hbm_to_vmem [thread:$0]  %s37_s26, 512, %s39_s28, [#allocation7], %s359_s9, %s359_s9, %s360_s10  }
   0x6   :  { %s21_s12 = sshll.u32 %s361_s11, 4  ;;  %s362_s13 = smov 64   ;;  %s22_s12 = int_to_ptr.vmem [resolvable:$true] %s21_s12 }
   0x7   :  { %s363_s14 = smov 4   ;;  %s51_s16 = sshll.u32 %s446_s5, 4  ;;  %s52_s16 = int_to_ptr.hbm [resolvable:$true] %s51_s16 }
   0x8   :  { %27 = dma.hbm_to_vmem [thread:$0]  %s20_s8, 128, %s22_s12, [#allocation4], %s362_s13, %s362_s13, %s363_s14  }
   0x9   :  { %s364_s17 = smov [#allocation8]  }
   0xa   :  { %s53_s18 = sshll.u32 %s364_s17, 4  ;;  %s54_s18 = int_to_ptr.vmem [resolvable:$true] %s53_s18 }
   0xb   :  { %59 = dma.hbm_to_vmem [thread:$0]  %s52_s16, 512, %s54_s18, [#allocation7], %s359_s9, %s359_s9, %s360_s10  }
   0xc   :  { %352 = dma.done.wait [#allocation4], 128  }
   0xd   :  { %353 = vsyncadd [#allocation4], 4294967168 }
   0xe   :  { %354 = dma.done.wait [#allocation7], 1024  }
   0xf   :  { %355 = vsyncadd [#allocation7], 4294966272  ;;  %vm79_vm0 = vcmask 253952   ;;  %v365_v0 = vmov 0   ;;  %v366_v1 = vmov 0.0   ;;  %vm92_vm1 = vcmask 1043456  }
  0x10   :  { %251 = vset.pattern.permute.xlu0 %v365_v0  ;;  %80 = vst.msk [vmem:[#allocation2] sm:$0x1] %vm79_vm0, %v366_v1  ;;  %v86_v2 = vld [vmem:[#allocation3] sm:$0xf]  ;;  %v87_v3 = vld [vmem:[#allocation3 + $0x4] sm:$0xf] }
  0x11   :  { %81 = vst.msk [vmem:[#allocation2 + $0x1] sm:$0x1] %vm79_vm0, %v366_v1  ;;  %vm88_vm2 = vcmask 64512   ;;  %v94_v4 = vsel %vm92_vm1, %v86_v2, 0  ;;  %v113_v5 = vsel %vm92_vm1, %v87_v3, 0  ;;  %v152_v9 = vld [vmem:[#allocation6 + $0x18] sm:$0xff] }
  0x12   :  { %v84_v6 = vld [vmem:[%s442_s1] sm:$0x1]  ;;  %103 = vmatpush.bf16.msra.mxu0 %v94_v4  ;;  %122 = vmatpush.bf16.msra.mxu1 %v113_v5  ;;  %v85_v8 = vld [vmem:[%s442_s1 + $0x1] sm:$0x1]  ;;  %v151_v10 = vld [vmem:[#allocation6 + $0x10] sm:$0xff]  ;;  %vm163_vm3 = vcmask 261120  }
  0x13   :  { %v138_v7 = vld [vmem:[%s443_s2] sm:$0x3]  ;;  %178 = vmatpush.msra.mxu2 %v152_v9  ;;  %v149_v12 = vld [vmem:[#allocation6] sm:$0xff]  ;;  %v190_v29 = vld [vmem:[#allocation8 + $0x18] sm:$0xff]  ;;  %s367_s25 = smov [#allocation9]   ;;  %s226_s29 = sshll.u32 %s448_s7, 4  ;;  %s227_s29 = int_to_ptr.hbm [resolvable:$true] %s226_s29 }
  0x14   :  { %141 = vperm.xlu0 %251, %v138_v7   ;;  %v150_v11 = vld [vmem:[#allocation6 + $0x8] sm:$0xff]  ;;  %210 = vmatpush.msra.mxu3 %v190_v29  ;;  %v189_v30 = vld [vmem:[#allocation8 + $0x10] sm:$0xff]  ;;  %v187_v32 = vld [vmem:[#allocation8] sm:$0xff]  ;;  %s224_s26 = sshll.u32 %s367_s25, 4  ;;  %s225_s26 = int_to_ptr.vmem [resolvable:$true] %s224_s26 }
  0x15   :  { %237 = vmatmul.msk.bf16.vlgmr.msra.gmra.mxu0 %vm88_vm2, %v84_v6  ;;  %238 = vmatmul.msk.bf16.vlgmr.msra.gmra.mxu1 %vm88_vm2, %v85_v8  ;;  %v188_v31 = vld [vmem:[#allocation8 + $0x8] sm:$0xff] }
  0x16   :  { %179 = vmatpush.msra.mxu2 %v151_v10  ;;  %211 = vmatpush.msra.mxu3 %v189_v30  ;;  %v252_v33 = vld [vmem:[%s445_s4] ss:$0 sm:$0xff] }
  0x17   :  { %v82_v13 = vld [vmem:[#allocation2] sm:$0x1]  ;;  %v253_v37 = vld [vmem:[%s447_s6] ss:$0 sm:$0xff] }
  0x18   :  { %180 = vmatpush.msra.mxu2 %v150_v11  ;;  %v83_v14 = vld [vmem:[#allocation2 + $0x1] sm:$0x1]  ;;  %212 = vmatpush.msra.mxu3 %v188_v31 }
  0x1a   :  { %181 = vmatpush.msra.mxu2 %v149_v12  ;;  %213 = vmatpush.msra.mxu3 %v187_v32 }
  0x86   :  { %v142_v19 = vpop.permute.xlu0 %141 }
  0x87   :  { %v143_v20 = vperm.slane %v142_v19, 0  ;;  %v144_v21 = vperm.slane %v142_v19, 1 }
  0x92   :  { %v105_v15 = vpop.f32.mrf.mxu0  ;;  %v124_v16 = vpop.f32.mrf.mxu1 }
  0x93   :  { %v128_v17 = vadd.f32 %v105_v15, %v82_v13  ;;  %v129_v18 = vadd.f32 %v124_v16, %v83_v14 }
  0x95   :  { %131 = vst.msk [vmem:[#allocation2] sm:$0x1] %vm79_vm0, %v128_v17 }
  0x96   :  { %132 = vst.msk [vmem:[#allocation2 + $0x1] sm:$0x1] %vm79_vm0, %v129_v18 }
  0x9a   :  { %v107_v22 = vpop.f32.mrf.mxu0  ;;  %v126_v23 = vpop.f32.mrf.mxu1 }
  0x9c   :  { %v136_v24 = vld [vmem:[#allocation2] sm:$0x1] }
  0x9d   :  { %v137_v25 = vld [vmem:[#allocation2 + $0x1] sm:$0x1]  ;;  %v147_v26 = vmul.f32 %v143_v20, %v136_v24 }
  0x9e   :  { %v148_v27 = vmul.f32 %v144_v21, %v137_v25 }
  0x9f   :  { %159 = vst [vmem:[#allocation1] ss:$9 sm:$0xff] %v147_v26 }
  0xa0   :  { %161 = vst [vmem:[#allocation1 + $0x1] ss:$9 sm:$0xff] %v148_v27 }
  0xa7   :  { %v162_v28 = vld [vmem:[#allocation1] sm:$0xff] }
  0xa8   :  { %239 = vmatmul.msk.f32.vlgmr.msra.gmra.mxu2 %vm163_vm3, %v162_v28 }
 0x12b   :  { %v183_v34 = vpop.f32.mrf.mxu2 }
 0x12c   :  { %v184_v35 = vadd.f32 %v252_v33, %v183_v34 }
 0x12e   :  { %254 = vtanh.f32 %v184_v35 }
 0x134   :  { %v255_v36 = vpop.eup %254 }
 0x135   :  { %240 = vmatmul.msk.f32.vlgmr.msra.gmra.mxu3 %vm163_vm3, %v255_v36 }
 0x1b8   :  { %v215_v38 = vpop.f32.mrf.mxu3 }
 0x1b9   :  { %v216_v39 = vadd.f32 %v253_v37, %v215_v38 }
 0x1bb   :  { %218 = vst [vmem:[#allocation9] sm:$0x3] %v216_v39 }
 0x1bc   :  { %229 = dma.vmem_to_hbm [thread:$0]  %s225_s26, 32, %s227_s29, [#allocation5]  }
 0x1bd   :  { %356 = dma.done.wait [#allocation5], 32  }
 0x1be   :  { %357 = vsyncadd [#allocation5], 4294967264 }
 0x1bf   :  { %234 = vsyncpa [#allocation4], 1 }
 0x1c0   :  { %235 = vsyncpa [#allocation7], 1 }
 0x1c1   :  { %236 = vsyncpa [#allocation5], 1 }

</bundles_post_ra>
